<compile_context>
chip_gen: v7x
topology: tpu7x:2x2x1
jax: 0.10.0
libtpu: 0.0.40
codegen_flags: <defaults>
</compile_context>

<pallas_src>
import functools

import jax
import jax.numpy as jnp
from jax.experimental import pallas as pl
from jax.experimental.pallas import tpu as pltpu


def _round_up(x: int, m: int) -> int:
    return ((x + m - 1) // m) * m


def _vmem_capacity_bytes() -> int:
    try:
        return int(pltpu.get_tpu_info().vmem_capacity_bytes)
    except Exception:  # pragma: no cover - conservative fallback
        return 128 * 1024 * 1024


def default_intermediate_tile(intermediate_size: int) -> int:
    """Per-generation I tile: 256 on 64 MiB-VMEM chips (v7x), 512 otherwise."""
    cap = _vmem_capacity_bytes()
    ti = 256 if cap <= 64 * 1024 * 1024 else 512
    return min(ti, _round_up(intermediate_size, 128))


def prepare_llama_mlp_weights(w_gate, w_up, w_down, *, ti: int):
    """One-time (weight-load-time) prep: pad I to a multiple of `ti` and pack gate/up into a
    single block-interleaved [H, 2*I_pad] matrix (gate block j adjacent to up block j)."""
    H, I = w_gate.shape
    I_pad = _round_up(I, ti)
    if I_pad != I:
        # Zero-padded intermediate columns contribute exactly 0 (silu(0)*0 = 0, and the
        # padded down-proj rows are 0), so correctness is unaffected.
        w_gate = jnp.pad(w_gate, ((0, 0), (0, I_pad - I)))
        w_up = jnp.pad(w_up, ((0, 0), (0, I_pad - I)))
        w_down = jnp.pad(w_down, ((0, I_pad - I), (0, 0)))
    n_blk = I_pad // ti
    w_gu = jnp.concatenate(
        [w_gate.reshape(H, n_blk, ti), w_up.reshape(H, n_blk, ti)], axis=2
    ).reshape(H, 2 * I_pad)
    return w_gu, w_down


def _llama_mlp_kernel(x_ref, wgu_ref, wd_ref, o_ref, acc_ref, *, ti: int):
    """One (split, M-tile, I-tile) step of the fused MLP.

    x_ref   : (tm, H)      resident across the I axis
    wgu_ref : (H, 2*ti)    fused [gate_j | up_j] weight block, streamed along I
    wd_ref  : (ti, H)      down-proj weight block, streamed along I
    o_ref   : (tm, H)      partial output for this split (written on last I step)
    acc_ref : (tm, H) f32  VMEM accumulator
    """
    j = pl.program_id(2)

    @pl.when(j == 0)
    def _():
        acc_ref[...] = jnp.zeros_like(acc_ref)

    x = x_ref[...]
    gu = jnp.dot(x, wgu_ref[...], preferred_element_type=jnp.float32)    # (tm, 2*ti) f32
    g = gu[:, :ti]
    u = gu[:, ti:]
    h = (g * jax.nn.sigmoid(g)) * u                                       # SiLU(g) * u, f32
    acc_ref[...] += jnp.dot(
        h.astype(wd_ref.dtype), wd_ref[...], preferred_element_type=jnp.float32
    )

    @pl.when(j == pl.num_programs(2) - 1)
    def _():
        o_ref[...] = acc_ref[...].astype(o_ref.dtype)


def _block_vmem_bytes(tm, ti, H, w_bytes, out_bytes):
    return (
        2 * (tm * H + H * 2 * ti + ti * H) * w_bytes   # double-buffered input blocks
        + 2 * tm * H * out_bytes                       # double-buffered output block
        + tm * H * 4                                   # f32 accumulator scratch
        + 3 * tm * ti * 4                              # g / u / h f32 temporaries
    )


def _pick_row_tile(H, ti, w_bytes, out_bytes, vmem_cap):
    """Largest per-generation row tile that fits the VMEM budget (arithmetic intensity on
    the streamed weights is exactly tm FLOP/byte, so bigger tm -> compute-bound)."""
    budget = int(vmem_cap * 0.7)
    if vmem_cap <= 64 * 1024 * 1024:          # v7x-class (64 MiB VMEM): target tm >= 384
        candidates = (512, 384, 256, 128)
    else:                                     # v5e/v6e (128 MiB VMEM): target tm >= 640 on v6e
        candidates = (768, 512, 384, 256, 128)
    for tm in candidates:
        if _block_vmem_bytes(tm, ti, H, w_bytes, out_bytes) <= budget:
            return tm
    return 128


@functools.partial(jax.jit, static_argnames=("ti",))
def llama_mlp(x, w_gu, w_down, *, ti: int):
    """x: [B, S, H]; w_gu: [H, 2*I_pad], w_down: [I_pad, H] from prepare_llama_mlp_weights."""
    B, S, H = x.shape
    I_pad = w_gu.shape[1] // 2
    assert I_pad % ti == 0 and w_down.shape[0] == I_pad
    M = B * S
    out_dtype = x.dtype
    w_bytes = w_gu.dtype.itemsize
    out_bytes = jnp.dtype(out_dtype).itemsize
    vmem_cap = _vmem_capacity_bytes()

    tm = _pick_row_tile(H, ti, w_bytes, out_bytes, vmem_cap)
    tm_eff = min(tm, _round_up(M, 8))          # multiple of 8 sublanes, clamped to problem
    M_pad = _round_up(M, tm_eff)

    x2d = x.reshape(M, H)
    if M_pad != M:
        x2d = jnp.pad(x2d, ((0, M_pad - M), (0, 0)))   # cheap: activations only

    m_tiles = M_pad // tm_eff
    n_i_tiles = I_pad // ti
    # Decode / small-M: split the I reduction into two "parallel" programs so both v7x
    # TensorCores stream weights; partial outputs are summed afterwards.
    i_splits = 2 if (m_tiles == 1 and n_i_tiles >= 2 and n_i_tiles % 2 == 0) else 1
    i_per_split = n_i_tiles // i_splits

    need = _block_vmem_bytes(tm_eff, ti, H, w_bytes, out_bytes)
    vmem_limit = int(min(vmem_cap * 0.85, max(2 * need, 32 * 1024 * 1024)))

    cp_kwargs = dict(
        dimension_semantics=("parallel", "parallel", "arbitrary"),
        vmem_limit_bytes=vmem_limit,
    )
    temp_bytes = 3 * tm_eff * ti * 4
    if temp_bytes > (1 << 20):
        # Reserve compiler-internal scratch for the (tm, ti) f32 temporaries at large tiles.
        cp_kwargs["internal_scratch_in_bytes"] = temp_bytes

    cost = pl.CostEstimate(
        flops=6 * M_pad * H * I_pad,
        transcendentals=2 * M_pad * I_pad,                      # sigmoid = exp + reciprocal
        bytes_accessed=(
            M_pad * H * x2d.dtype.itemsize                      # activations read once
            + m_tiles * (w_gu.size + w_down.size) * w_bytes     # weights once per M tile
            + i_splits * M_pad * H * out_bytes                  # output writeback
        ),
    )

    grid = (i_splits, m_tiles, i_per_split)

    out3d = pl.pallas_call(
        functools.partial(_llama_mlp_kernel, ti=ti),
        out_shape=jax.ShapeDtypeStruct((i_splits, M_pad, H), out_dtype),
        grid_spec=pltpu.PrefetchScalarGridSpec(
            num_scalar_prefetch=0,
            grid=grid,
            in_specs=[
                # x tile: block index constant across the I axis -> stays VMEM-resident.
                pl.BlockSpec((tm_eff, H), lambda s, i, j: (i, 0)),
                # fused gate|up weight block, streamed along (this split's slice of) I.
                pl.BlockSpec((H, 2 * ti), lambda s, i, j: (0, s * i_per_split + j)),
                # down-proj weight block, streamed along I.
                pl.BlockSpec((ti, H), lambda s, i, j: (s * i_per_split + j, 0)),
            ],
            # Same (s, i, 0) block across the I axis -> output/accumulator stays resident.
            out_specs=pl.BlockSpec((None, tm_eff, H), lambda s, i, j: (s, i, 0)),
            scratch_shapes=[pltpu.VMEM((tm_eff, H), jnp.float32)],
        ),
        compiler_params=pltpu.CompilerParams(**cp_kwargs),
        cost_estimate=cost,
    )(x2d, w_gu, w_down)

    if i_splits == 1:
        out2d = out3d[0]
    else:
        out2d = out3d.astype(jnp.float32).sum(axis=0).astype(out_dtype)
    return out2d[:M].reshape(B, S, H)


def _reference(x, w_gate, w_up, w_down):
    """Pure-JAX f32 reference (matches the PyTorch module semantics)."""
    xf = x.astype(jnp.float32)
    g = xf @ w_gate.astype(jnp.float32)
    u = xf @ w_up.astype(jnp.float32)
    return (jax.nn.silu(g) * u) @ w_down.astype(jnp.float32)


if __name__ == "__main__":
    # Small, module-consistent shapes: batch=2, seq=8, hidden=128, intermediate=256.
    B, S, H, I = 2, 8, 128, 256
    key = jax.random.PRNGKey(0)
    kx, kg, ku, kd = jax.random.split(key, 4)

    # bf16 activations/weights (MXU-native), f32 accumulation inside the kernel.
    x = jax.random.normal(kx, (B, S, H), dtype=jnp.float32).astype(jnp.bfloat16)
    # PyTorch nn.Linear stores weight as [out, in]; we keep the transposed [in, out] form so
    # the kernel computes x @ W directly.
    w_gate = (jax.random.normal(kg, (H, I), dtype=jnp.float32) * 0.02).astype(jnp.bfloat16)
    w_up = (jax.random.normal(ku, (H, I), dtype=jnp.float32) * 0.02).astype(jnp.bfloat16)
    w_down = (jax.random.normal(kd, (I, H), dtype=jnp.float32) * 0.02).astype(jnp.bfloat16)

    ref = _reference(x, w_gate, w_up, w_down).reshape(B, S, H)

    # Path 1: per-generation default I tile (single I block at this toy size).
    ti = default_intermediate_tile(I)
    w_gu, w_down_p = prepare_llama_mlp_weights(w_gate, w_up, w_down, ti=ti)
    out = jax.block_until_ready(llama_mlp(x, w_gu, w_down_p, ti=ti))
    assert out.shape == (B, S, H)
    assert jnp.allclose(out.astype(jnp.float32), ref, atol=2e-2, rtol=2e-2)

    # Path 2: ti=128 gives 2 I blocks with a single M tile -> exercises the decode-style
    # split of the reduction across two "parallel" programs (v7x dual-TensorCore path).
    ti2 = 128
    w_gu2, w_down_p2 = prepare_llama_mlp_weights(w_gate, w_up, w_down, ti=ti2)
    out_split = jax.block_until_ready(llama_mlp(x, w_gu2, w_down_p2, ti=ti2))
    assert out_split.shape == (B, S, H)
    assert jnp.allclose(out_split.astype(jnp.float32), ref, atol=2e-2, rtol=2e-2)

    # Path 3: ragged M (batch*seq not a tile multiple) -> exercises row padding + slicing.
    x2 = jax.random.normal(kx, (1, 5, H), dtype=jnp.float32).astype(jnp.bfloat16)
    ref2 = _reference(x2, w_gate, w_up, w_down).reshape(1, 5, H)
    out2 = jax.block_until_ready(llama_mlp(x2, w_gu, w_down_p, ti=ti))
    assert out2.shape == (1, 5, H)
    assert jnp.allclose(out2.astype(jnp.float32), ref2, atol=2e-2, rtol=2e-2)

    print("KERNEL_OK")
</pallas_src>

<mosaic_0001>
module attributes {stable_mosaic.version = 11 : i64} {
  func.func @_llama_mlp_kernel(%arg0: i32, %arg1: i32, %arg2: i32, %arg3: memref<16x128xbf16, #tpu.memory_space<vmem>>, %arg4: memref<128x512xbf16, #tpu.memory_space<vmem>>, %arg5: memref<256x128xbf16, #tpu.memory_space<vmem>>, %arg6: memref<1x16x128xbf16, #tpu.memory_space<vmem>>, %arg7: memref<16x128xf32, #tpu.memory_space<vmem>>) attributes {dimension_semantics = [#tpu.dimension_semantics<parallel>, #tpu.dimension_semantics<parallel>, #tpu.dimension_semantics<arbitrary>], iteration_bounds = array<i64: 1, 1, 1>, scalar_prefetch = 0 : i64, scratch_operands = 1 : i64, tpu.core_type = #tpu.core_type<tc>, window_params = [{transform_indices = @transform_0, window_bounds = array<i64: 16, 128>}, {transform_indices = @transform_1, window_bounds = array<i64: 128, 512>}, {transform_indices = @transform_2, window_bounds = array<i64: 256, 128>}, {transform_indices = @transform_3, window_bounds = array<i64: 1, 16, 128>}]} {
    %c0_i32 = arith.constant 0 : i32
    %0 = arith.cmpi eq, %arg2, %c0_i32 : i32
    %1 = arith.extui %0 : i1 to i32
    %c0_i32_0 = arith.constant 0 : i32
    %2 = arith.cmpi ne, %1, %c0_i32_0 : i32
    scf.if %2 {
      %cst_14 = arith.constant 0.000000e+00 : f32
      %24 = vector.broadcast %cst_14 : f32 to vector<16x128xf32>
      %c0_15 = arith.constant 0 : index
      %c0_16 = arith.constant 0 : index
      %25 = vector.load %arg7[%c0_15, %c0_16] : memref<16x128xf32, #tpu.memory_space<vmem>>, vector<16x128xf32>
      tpu.vector_store %arg7[%c0_15, %c0_16], %24 {strides = array<i32>} : memref<16x128xf32, #tpu.memory_space<vmem>>, vector<16x128xf32>,
    } else {
    }
    %c0 = arith.constant 0 : index
    %c0_1 = arith.constant 0 : index
    %3 = vector.load %arg3[%c0, %c0_1] : memref<16x128xbf16, #tpu.memory_space<vmem>>, vector<16x128xbf16>
    %c0_2 = arith.constant 0 : index
    %c0_3 = arith.constant 0 : index
    %4 = vector.load %arg4[%c0_2, %c0_3] : memref<128x512xbf16, #tpu.memory_space<vmem>>, vector<128x512xbf16>
    %cst = arith.constant dense<0.000000e+00> : vector<16x512xf32>
    %5 = tpu.matmul %3, %4, %cst {dimension_numbers = #tpu.dot_dimension_numbers<[1], [0], [0], [1], [0, 0, 1, 1], [], []>} : vector<16x128xbf16>, vector<128x512xbf16>, vector<16x512xf32> -> vector<16x512xf32>
    %6 = vector.extract_strided_slice %5 {offsets = [0, 0], sizes = [16, 256], strides = [1, 1]} : vector<16x512xf32> to vector<16x256xf32>
    %7 = vector.extract_strided_slice %5 {offsets = [0, 256], sizes = [16, 256], strides = [1, 1]} : vector<16x512xf32> to vector<16x256xf32>
    %8 = arith.negf %6 : vector<16x256xf32>
    %9 = math.exp %8 : vector<16x256xf32>
    %cst_4 = arith.constant 1.000000e+00 : f32
    %10 = vector.broadcast %cst_4 : f32 to vector<16x256xf32>
    %11 = arith.addf %10, %9 : vector<16x256xf32>
    %12 = arith.divf %10, %11 : vector<16x256xf32>
    %13 = arith.mulf %6, %12 : vector<16x256xf32>
    %14 = arith.mulf %13, %7 : vector<16x256xf32>
    %c0_5 = arith.constant 0 : index
    %c0_6 = arith.constant 0 : index
    %15 = vector.load %arg7[%c0_5, %c0_6] : memref<16x128xf32, #tpu.memory_space<vmem>>, vector<16x128xf32>
    %16 = arith.truncf %14 : vector<16x256xf32> to vector<16x256xbf16>
    %c0_7 = arith.constant 0 : index
    %c0_8 = arith.constant 0 : index
    %17 = vector.load %arg5[%c0_7, %c0_8] : memref<256x128xbf16, #tpu.memory_space<vmem>>, vector<256x128xbf16>
    %cst_9 = arith.constant dense<0.000000e+00> : vector<16x128xf32>
    %18 = tpu.matmul %16, %17, %cst_9 {dimension_numbers = #tpu.dot_dimension_numbers<[1], [0], [0], [1], [0, 0, 1, 1], [], []>} : vector<16x256xbf16>, vector<256x128xbf16>, vector<16x128xf32> -> vector<16x128xf32>
    %19 = arith.addf %15, %18 : vector<16x128xf32>
    %c0_10 = arith.constant 0 : index
    %c0_11 = arith.constant 0 : index
    %20 = vector.load %arg7[%c0_10, %c0_11] : memref<16x128xf32, #tpu.memory_space<vmem>>, vector<16x128xf32>
    tpu.vector_store %arg7[%c0_10, %c0_11], %19 {strides = array<i32>} : memref<16x128xf32, #tpu.memory_space<vmem>>, vector<16x128xf32>,
    %c0_i32_12 = arith.constant 0 : i32
    %21 = arith.cmpi eq, %arg2, %c0_i32_12 : i32
    %22 = arith.extui %21 : i1 to i32
    %c0_i32_13 = arith.constant 0 : i32
    %23 = arith.cmpi ne, %22, %c0_i32_13 : i32
    scf.if %23 {
      %c0_14 = arith.constant 0 : index
      %c0_15 = arith.constant 0 : index
      %24 = vector.load %arg7[%c0_14, %c0_15] : memref<16x128xf32, #tpu.memory_space<vmem>>, vector<16x128xf32>
      %25 = arith.truncf %24 : vector<16x128xf32> to vector<16x128xbf16>
      %c0_16 = arith.constant 0 : index
      %c0_17 = arith.constant 0 : index
      %c0_18 = arith.constant 0 : index
      %26 = vector.load %arg6[%c0_16, %c0_17, %c0_18] : memref<1x16x128xbf16, #tpu.memory_space<vmem>>, vector<1x16x128xbf16>
      %27 = vector.shape_cast %26 : vector<1x16x128xbf16> to vector<16x128xbf16>
      %28 = vector.shape_cast %25 : vector<16x128xbf16> to vector<1x16x128xbf16>
      tpu.vector_store %arg6[%c0_16, %c0_17, %c0_18], %28 {strides = array<i32>} : memref<1x16x128xbf16, #tpu.memory_space<vmem>>, vector<1x16x128xbf16>,
    } else {
    }
    return
  }
  func.func @transform_0(%arg0: i32, %arg1: i32, %arg2: i32) -> (i32, i32) {
    %c0_i32 = arith.constant 0 : i32
    %c0_i32_0 = arith.constant 0 : i32
    return %arg1, %c0_i32 : i32, i32
  }
  func.func @transform_1(%arg0: i32, %arg1: i32, %arg2: i32) -> (i32, i32) {
    %c1_i32 = arith.constant 1 : i32
    %0 = arith.muli %arg0, %c1_i32 : i32
    %1 = arith.addi %0, %arg2 : i32
    %c0_i32 = arith.constant 0 : i32
    %c0_i32_0 = arith.constant 0 : i32
    return %c0_i32, %1 : i32, i32
  }
  func.func @transform_2(%arg0: i32, %arg1: i32, %arg2: i32) -> (i32, i32) {
    %c1_i32 = arith.constant 1 : i32
    %0 = arith.muli %arg0, %c1_i32 : i32
    %1 = arith.addi %0, %arg2 : i32
    %c0_i32 = arith.constant 0 : i32
    %c0_i32_0 = arith.constant 0 : i32
    return %1, %c0_i32 : i32, i32
  }
  func.func @transform_3(%arg0: i32, %arg1: i32, %arg2: i32) -> (i32, i32, i32) {
    %c0_i32 = arith.constant 0 : i32
    %c0_i32_0 = arith.constant 0 : i32
    return %arg0, %arg1, %c0_i32 : i32, i32, i32
  }
}

</mosaic_0001>

<bundles_post_ra>
// kernel: llama_mlp.1
= control target key start
LH: loop header
LB: loop body
LE: loop exit
PB: predicated region body
PF: predicated region fallthrough
CT: control target
= control target key end

     0   :  { %8 = vsyncpa [#allocation4], 0  ;;  %s957_s0 = inlined_call_operand.hbm [shape: bf16[16,128], index: 0, kind: input, shape index: {}]   ;;  %s958_s1 = inlined_call_operand.hbm [shape: bf16[128,512], index: 1, kind: input, shape index: {}]   ;;  %s959_s2 = inlined_call_operand.hbm [shape: bf16[256,128], index: 2, kind: input, shape index: {}]   ;;  %s960_s3 = inlined_call_operand.hbm [shape: bf16[1,16,128], index: 3, kind: output, shape index: {}]  }
   0x1   :  { %9 = vsyncpa [#allocation7], 0 }
   0x2   :  { %10 = vsyncpa [#allocation5], 0  ;;  %s871_s12 = smov [#allocation6]   ;;  %s777_s16 = scalar_lea.hbm %s958_s1, 4096 }
   0x3   :  { %s32_s13 = sshll.u32 %s871_s12, 4  ;;  %p778_p0 = scmp.ne.s32.totalorder %s958_s1, %s777_s16  ;;  %s33_s13 = int_to_ptr.vmem [resolvable:$true] %s32_s13 }
   0x4   :  { %p781_p1 = scmp.lt.u32.totalorder %s777_s16, %s958_s1 }
   0x6   :  { %p783_p2 = pnand %p781_p1, %p778_p0 }
   0x8   :  { %786 = shalt.err (!%p783_p2)
}
   0x9   :  { %s787_s21 = scalar_lea.vmem %s33_s13, 4096  ;;  %p792_p4 = scmp.lt.s32.totalorder %s33_s13, %s33_s13 }
   0xa   :  { %p788_p3 = scmp.ne.s32.totalorder %s33_s13, %s787_s21  ;;  %p793_p5 = scmp.lt.s32.totalorder %s787_s21, %s787_s21 }
   0xc   :  { %p794_p6 = por %p793_p5, %p792_p4 }
   0xe   :  { %p795_p7 = pnand %p794_p6, %p788_p3 }
  0x10   :  { %798 = shalt.err (!%p795_p7)
}
  0x11   :  { %s872_s22 = smov 256   ;;  %s873_s23 = smov 16  }
  0x12   :  { %38 = dma.hbm_to_vmem [thread:$0]  %s958_s1, 4096, %s33_s13, [#allocation7], %s872_s22, %s872_s22, %s873_s23  }
  0x13   :  { %s874_s26 = smov [#allocation3]   ;;  %s799_s30 = scalar_lea.hbm %s957_s0, 128 }
  0x14   :  { %s16_s27 = sshll.u32 %s874_s26, 4  ;;  %p800_p8 = scmp.ne.s32.totalorder %s957_s0, %s799_s30  ;;  %s17_s27 = int_to_ptr.vmem [resolvable:$true] %s16_s27 }
  0x15   :  { %p803_p9 = scmp.lt.u32.totalorder %s799_s30, %s957_s0 }
  0x17   :  { %p805_p10 = pnand %p803_p9, %p800_p8 }
  0x19   :  { %808 = shalt.err (!%p805_p10)
}
  0x1a   :  { %s809_s8 = scalar_lea.vmem %s17_s27, 128  ;;  %p814_p12 = scmp.lt.s32.totalorder %s17_s27, %s17_s27 }
  0x1b   :  { %p810_p11 = scmp.ne.s32.totalorder %s17_s27, %s809_s8  ;;  %p815_p13 = scmp.lt.s32.totalorder %s809_s8, %s809_s8 }
  0x1d   :  { %p816_p0 = por %p815_p13, %p814_p12 }
  0x1f   :  { %p817_p1 = pnand %p816_p0, %p810_p11 }
  0x21   :  { %820 = shalt.err (!%p817_p1)
}
  0x22   :  { %s875_s1 = smov 64   ;;  %s876_s9 = smov 4  }
  0x23   :  { %22 = dma.hbm_to_vmem [thread:$0]  %s957_s0, 128, %s17_s27, [#allocation4], %s875_s1, %s875_s1, %s876_s9  }
  0x24   :  { %s877_s12 = smov [#allocation8]   ;;  %s821_s16 = scalar_lea.hbm %s959_s2, 2048 }
  0x25   :  { %s48_s13 = sshll.u32 %s877_s12, 4  ;;  %p822_p2 = scmp.ne.s32.totalorder %s959_s2, %s821_s16  ;;  %s49_s13 = int_to_ptr.vmem [resolvable:$true] %s48_s13 }
  0x26   :  { %p825_p3 = scmp.lt.u32.totalorder %s821_s16, %s959_s2 }
  0x28   :  { %p827_p4 = pnand %p825_p3, %p822_p2 }
  0x2a   :  { %830 = shalt.err (!%p827_p4)
}
  0x2b   :  { %s831_s21 = scalar_lea.vmem %s49_s13, 2048  ;;  %p836_p6 = scmp.lt.s32.totalorder %s49_s13, %s49_s13 }
  0x2c   :  { %p832_p5 = scmp.ne.s32.totalorder %s49_s13, %s831_s21  ;;  %p837_p7 = scmp.lt.s32.totalorder %s831_s21, %s831_s21 }
  0x2e   :  { %p838_p8 = por %p837_p7, %p836_p6 }
  0x30   :  { %p839_p9 = pnand %p838_p8, %p832_p5 }
  0x32   :  { %842 = shalt.err (!%p839_p9)
}
  0x33   :  { %54 = dma.hbm_to_vmem [thread:$0]  %s959_s2, 2048, %s49_s13, [#allocation7], %s875_s1, %s875_s1, %s876_s9  }
  0x34   :  { %865 = dma.done.wait [#allocation4], 128  }
  0x35   :  { %866 = vsyncadd [#allocation4], 4294967168 }
  0x36   :  { %867 = dma.done.wait [#allocation7], 6144  }
  0x37   :  { %868 = vsyncadd [#allocation7], 4294961152  ;;  %v878_v0 = vmov 0   ;;  %v696_v1 = vld [vmem:[#allocation6 + $0x4] ss:$16 sps:$4 sm:$0xff]   ;;  %v726_v29 = vld [vmem:[#allocation3] sm:$0xff]  }
  0x38   :  { %307 = vmatprep.mubr.bf16.mxu0 %v878_v0  ;;  %350 = vmatprep.mubr.bf16.mxu1 %v878_v0  ;;  %v698_v2 = vld [vmem:[#allocation6] ss:$16 sps:$4 sm:$0xff]   ;;  %v699_v3 = vld [vmem:[#allocation6 + $0x24] ss:$16 sps:$4 sm:$0xff]   ;;  %v717_v8 = vld [vmem:[#allocation6 + $0xc] ss:$16 sps:$4 sm:$0xff]  }
  0x39   :  { %275 = vmatprep.subr.bf16.mxu0 %v696_v1  ;;  %v701_v4 = vld [vmem:[#allocation6 + $0x20] ss:$16 sps:$4 sm:$0xff]   ;;  %v702_v5 = vld [vmem:[#allocation6 + $0x44] ss:$16 sps:$4 sm:$0xff]   ;;  %v719_v9 = vld [vmem:[#allocation6 + $0x8] ss:$16 sps:$4 sm:$0xff]   ;;  %318 = vmatprep.subr.bf16.mxu1 %v717_v8 }
  0x3a   :  { %276 = vmatpush1.bf16.msra.mxu0 %v698_v2  ;;  %v704_v6 = vld [vmem:[#allocation6 + $0x40] ss:$16 sps:$4 sm:$0xff]   ;;  %v705_v7 = vld [vmem:[#allocation6 + $0x64] ss:$16 sps:$4 sm:$0xff]   ;;  %v723_v12 = vld [vmem:[#allocation6 + $0x2c] ss:$16 sps:$4 sm:$0xff]   ;;  %319 = vmatpush1.bf16.msra.mxu1 %v719_v9 }
  0x3b   :  { %277 = vmatprep.subr.bf16.mxu0 %v699_v3  ;;  %v707_v10 = vld [vmem:[#allocation6 + $0x60] ss:$16 sps:$4 sm:$0xff]   ;;  %v708_v11 = vld [vmem:[#allocation6 + $0x84] ss:$16 sps:$4 sm:$0xff]   ;;  %v725_v13 = vld [vmem:[#allocation6 + $0x28] ss:$16 sps:$4 sm:$0xff]   ;;  %320 = vmatprep.subr.bf16.mxu1 %v723_v12 }
  0x3c   :  { %v710_v14 = vld [vmem:[#allocation6 + $0x80] ss:$16 sps:$4 sm:$0xff]   ;;  %v727_v15 = vld [vmem:[#allocation6 + $0x4c] ss:$16 sps:$4 sm:$0xff]   ;;  %v711_v16 = vld [vmem:[#allocation6 + $0xa4] ss:$16 sps:$4 sm:$0xff]  }
  0x3d   :  { %v729_v17 = vld [vmem:[#allocation6 + $0x48] ss:$16 sps:$4 sm:$0xff]   ;;  %v730_v18 = vld [vmem:[#allocation6 + $0x6c] ss:$16 sps:$4 sm:$0xff]   ;;  %v713_v19 = vld [vmem:[#allocation6 + $0xa0] ss:$16 sps:$4 sm:$0xff]  }
  0x3e   :  { %278 = vmatpush1.bf16.msra.mxu0 %v701_v4  ;;  %321 = vmatpush1.bf16.msra.mxu1 %v725_v13  ;;  %v714_v20 = vld [vmem:[#allocation6 + $0xc4] ss:$16 sps:$4 sm:$0xff]   ;;  %v716_v21 = vld [vmem:[#allocation6 + $0xc0] ss:$16 sps:$4 sm:$0xff]   ;;  %v732_v22 = vld [vmem:[#allocation6 + $0x68] ss:$16 sps:$4 sm:$0xff]  }
  0x3f   :  { %279 = vmatprep.subr.bf16.mxu0 %v702_v5  ;;  %322 = vmatprep.subr.bf16.mxu1 %v727_v15  ;;  %v720_v23 = vld [vmem:[#allocation6 + $0xe4] ss:$16 sps:$4 sm:$0xff]   ;;  %v733_v24 = vld [vmem:[#allocation6 + $0x8c] ss:$16 sps:$4 sm:$0xff]   ;;  %v735_v25 = vld [vmem:[#allocation6 + $0x88] ss:$16 sps:$4 sm:$0xff]  }
  0x40   :  { %v736_v26 = vld [vmem:[#allocation6 + $0xac] ss:$16 sps:$4 sm:$0xff]   ;;  %v722_v27 = vld [vmem:[#allocation6 + $0xe0] ss:$16 sps:$4 sm:$0xff]   ;;  %v738_v28 = vld [vmem:[#allocation6 + $0xa8] ss:$16 sps:$4 sm:$0xff]  }
  0x41   :  { %v739_v30 = vld [vmem:[#allocation6 + $0xcc] ss:$16 sps:$4 sm:$0xff]   ;;  %v741_v31 = vld [vmem:[#allocation6 + $0xc8] ss:$16 sps:$4 sm:$0xff]   ;;  %v745_v34 = vld [vmem:[#allocation8 + $0x40] sm:$0xff]   ;;  %s879_s2 = smov [#allocation9]  }
  0x42   :  { %280 = vmatpush1.bf16.msra.mxu0 %v704_v6  ;;  %323 = vmatpush1.bf16.msra.mxu1 %v729_v17  ;;  %v742_v32 = vld [vmem:[#allocation6 + $0xec] ss:$16 sps:$4 sm:$0xff]   ;;  %v744_v33 = vld [vmem:[#allocation6 + $0xe8] ss:$16 sps:$4 sm:$0xff]   ;;  %v746_v35 = vld [vmem:[#allocation8] sm:$0xff]   ;;  %s590_s23 = sshll.u32 %s879_s2, 4  ;;  %s591_s23 = int_to_ptr.vmem [resolvable:$true] %s590_s23 }
  0x43   :  { %281 = vmatprep.subr.bf16.mxu0 %v705_v7  ;;  %324 = vmatprep.subr.bf16.mxu1 %v730_v18  ;;  %v747_v36 = vld [vmem:[#allocation8 + $0x48] sm:$0xff]   ;;  %v749_v38 = vld [vmem:[#allocation8 + $0x50] sm:$0xff]   ;;  %v751_v40 = vld [vmem:[#allocation8 + $0x58] sm:$0xff]   ;;  %s843_s24 = scalar_lea.vmem %s591_s23, 128  ;;  %p848_p11 = scmp.lt.s32.totalorder %s591_s23, %s591_s23 }
  0x44   :  { %v748_v37 = vld [vmem:[#allocation8 + $0x8] sm:$0xff]   ;;  %v750_v39 = vld [vmem:[#allocation8 + $0x10] sm:$0xff]   ;;  %v752_v41 = vld [vmem:[#allocation8 + $0x18] sm:$0xff]   ;;  %p844_p10 = scmp.ne.s32.totalorder %s591_s23, %s843_s24  ;;  %p849_p12 = scmp.lt.s32.totalorder %s843_s24, %s843_s24 }
  0x45   :  { %v753_v42 = vld [vmem:[#allocation8 + $0x60] sm:$0xff]   ;;  %v755_v44 = vld [vmem:[#allocation8 + $0x68] sm:$0xff]   ;;  %v757_v46 = vld [vmem:[#allocation8 + $0x70] sm:$0xff]  }
  0x46   :  { %282 = vmatpush1.bf16.msra.mxu0 %v707_v10  ;;  %325 = vmatpush1.bf16.msra.mxu1 %v732_v22  ;;  %v754_v43 = vld [vmem:[#allocation8 + $0x20] sm:$0xff]   ;;  %v756_v45 = vld [vmem:[#allocation8 + $0x28] sm:$0xff]   ;;  %v758_v47 = vld [vmem:[#allocation8 + $0x30] sm:$0xff]   ;;  %p850_p13 = por %p849_p12, %p848_p11 }
  0x47   :  { %283 = vmatprep.subr.bf16.mxu0 %v708_v11  ;;  %326 = vmatprep.subr.bf16.mxu1 %v733_v24  ;;  %v759_v48 = vld [vmem:[#allocation8 + $0x78] sm:$0xff]  }
  0x48   :  { %v760_v49 = vld [vmem:[#allocation8 + $0x38] sm:$0xff]   ;;  %p851_p0 = pnand %p850_p13, %p844_p10 }
  0x4a   :  { %284 = vmatpush1.bf16.msra.mxu0 %v710_v14  ;;  %327 = vmatpush1.bf16.msra.mxu1 %v735_v25 }
  0x4b   :  { %285 = vmatprep.subr.bf16.mxu0 %v711_v16  ;;  %328 = vmatprep.subr.bf16.mxu1 %v736_v26 }
  0x4e   :  { %286 = vmatpush1.bf16.msra.mxu0 %v713_v19  ;;  %329 = vmatpush1.bf16.msra.mxu1 %v738_v28 }
  0x4f   :  { %287 = vmatprep.subr.bf16.mxu0 %v714_v20  ;;  %330 = vmatprep.subr.bf16.mxu1 %v739_v30 }
  0x52   :  { %288 = vmatpush1.bf16.msra.mxu0 %v716_v21  ;;  %331 = vmatpush1.bf16.msra.mxu1 %v741_v31 }
  0x53   :  { %289 = vmatprep.subr.bf16.mxu0 %v720_v23  ;;  %332 = vmatprep.subr.bf16.mxu1 %v742_v32 }
  0x56   :  { %290 = vmatpush1.bf16.msra.mxu0 %v722_v27  ;;  %333 = vmatpush1.bf16.msra.mxu1 %v744_v33 }
  0x57   :  { %665 = vmatprep.subr.bf16.mxu0 %v745_v34 }
  0x59   :  { %308 = vmatmul.mubr.bf16.vlgmr.msra.gmra.mrb[0].mxu0 %v726_v29  ;;  %351 = vmatmul.mubr.bf16.vlgmr.msra.gmra.mrb[0].mxu1 %v726_v29 }
  0x5a   :  { %666 = vmatpush3.bf16.msra.mxu0 %v746_v35 }
  0x5b   :  { %667 = vmatprep.subr.bf16.mxu0 %v747_v36 }
  0x5e   :  { %668 = vmatpush3.bf16.msra.mxu0 %v748_v37 }
  0x5f   :  { %669 = vmatprep.subr.bf16.mxu0 %v749_v38 }
  0x62   :  { %670 = vmatpush3.bf16.msra.mxu0 %v750_v39 }
  0x63   :  { %671 = vmatprep.subr.bf16.mxu0 %v751_v40 }
  0x66   :  { %672 = vmatpush3.bf16.msra.mxu0 %v752_v41 }
  0x67   :  { %673 = vmatprep.subr.bf16.mxu0 %v753_v42 }
  0x6a   :  { %674 = vmatpush3.bf16.msra.mxu0 %v754_v43 }
  0x6b   :  { %675 = vmatprep.subr.bf16.mxu0 %v755_v44 }
  0x6e   :  { %676 = vmatpush3.bf16.msra.mxu0 %v756_v45 }
  0x6f   :  { %677 = vmatprep.subr.bf16.mxu0 %v757_v46 }
  0x72   :  { %678 = vmatpush3.bf16.msra.mxu0 %v758_v47 }
  0x73   :  { %679 = vmatprep.subr.bf16.mxu0 %v759_v48 }
  0x76   :  { %680 = vmatpush3.bf16.msra.mxu0 %v760_v49 }
 0x12c   :  { %v309_v50 = vpop.f32.mrb[0].mxu0  ;;  %v352_v58 = vpop.f32.mrb[0].mxu1 }
 0x12d   :  { %v636_v51 = vmul.f32 -1.442695, %v309_v50  ;;  %v311_v52 = vpop.f32.mrb[1].mxu0  ;;  %v354_v59 = vpop.f32.mrb[1].mxu1 }
 0x12e   :  { %v637_v53 = vmul.f32 -1.442695, %v311_v52  ;;  %v313_v54 = vpop.f32.mrb[2].mxu0  ;;  %v356_v60 = vpop.f32.mrb[2].mxu1 }
 0x12f   :  { %761 = vpow2.f32 %v636_v51  ;;  %v638_v55 = vmul.f32 -1.442695, %v313_v54  ;;  %v315_v56 = vpop.f32.mrb[3].mxu0  ;;  %v358_v62 = vpop.f32.mrb[3].mxu1 }
 0x130   :  { %763 = vpow2.f32 %v637_v53  ;;  %v639_v57 = vmul.f32 -1.442695, %v315_v56 }
 0x131   :  { %765 = vpow2.f32 %v638_v55 }
 0x132   :  { %767 = vpow2.f32 %v639_v57 }
 0x139   :  { %v762_v61 = vpop.eup %761 }
 0x13a   :  { %v764_v63 = vpop.eup %763  ;;  %v373_v0 = vadd.f32 1.0, %v762_v61 }
 0x13b   :  { %v766_v1 = vpop.eup %765  ;;  %v374_v2 = vadd.f32 1.0, %v764_v63 }
 0x13c   :  { %v768_v3 = vpop.eup %767  ;;  %769 = vrcp.f32 %v373_v0  ;;  %v375_v4 = vadd.f32 1.0, %v766_v1 }
 0x13d   :  { %771 = vrcp.f32 %v374_v2  ;;  %v376_v5 = vadd.f32 1.0, %v768_v3 }
 0x13e   :  { %773 = vrcp.f32 %v375_v4 }
 0x13f   :  { %775 = vrcp.f32 %v376_v5 }
 0x146   :  { %v770_v6 = vpop.eup %769 }
 0x147   :  { %v772_v7 = vpop.eup %771  ;;  %v385_v8 = vmul.f32 %v770_v6, %v309_v50 }
 0x148   :  { %v774_v9 = vpop.eup %773  ;;  %v386_v10 = vmul.f32 %v772_v7, %v311_v52 }
 0x149   :  { %v776_v11 = vpop.eup %775  ;;  %v387_v12 = vmul.f32 %v774_v9, %v313_v54  ;;  %v389_v13 = vmul.f32 %v385_v8, %v352_v58 }
 0x14a   :  { %v388_v14 = vmul.f32 %v776_v11, %v315_v56  ;;  %v390_v15 = vmul.f32 %v386_v10, %v354_v59 }
 0x14b   :  { %v391_v16 = vmul.f32 %v387_v12, %v356_v60 }
 0x14c   :  { %v392_v17 = vmul.f32 %v388_v14, %v358_v62 }
 0x14d   :  { %v395_v18 = vpack.c.bf16 %v391_v16, %v389_v13 }
 0x14e   :  { %v396_v19 = vpack.c.bf16 %v392_v17, %v390_v15 }
 0x150   :  { %557 = vmatprep.mubr.bf16.mxu0 %v396_v19 }
 0x151   :  { %558 = vmatmul.mubr.bf16.vlgmr.msra.gmra.mrb[4].mxu0 %v395_v18 }
 0x224   :  { %v681_v20 = vpop.f32.mrb[4].mxu0 }
 0x225   :  { %v682_v21 = vpop.f32.mrb[5].mxu0 }
 0x226   :  { %v683_v22 = vadd.f32 %v682_v21, %v681_v20  ;;  %v684_v23 = vpop.f32.mrb[6].mxu0 }
 0x227   :  { %v685_v24 = vpop.f32.mrb[7].mxu0 }
 0x228   :  { %v686_v25 = vadd.f32 %v685_v24, %v684_v23 }
 0x22a   :  { %v663_v26 = vpack.c.bf16 %v686_v25, %v683_v22 }
 0x22c   :  { %664 = vst [vmem:[#allocation9] sm:$0xff] %v663_v26  }
 0x22d   :  { %854 = shalt.err (!%p851_p0)
}
 0x22e   :  { %s855_s27 = scalar_lea.hbm %s960_s3, 128 }
 0x22f   :  { %p856_p1 = scmp.ne.s32.totalorder %s960_s3, %s855_s27  ;;  %p859_p2 = scmp.lt.u32.totalorder %s855_s27, %s960_s3 }
 0x231   :  { %p861_p3 = pnand %p859_p2, %p856_p1 }
 0x233   :  { %864 = shalt.err (!%p861_p3)
}
 0x234   :  { %596 = dma.vmem_to_hbm [thread:$0]  %s591_s23, 128, %s960_s3, [#allocation5], %s875_s1, %s875_s1, %s876_s9  }
 0x235   :  { %869 = dma.done.wait [#allocation5], 128  }
 0x236   :  { %870 = vsyncadd [#allocation5], 4294967168 }
 0x237   :  { %600 = vsyncpa [#allocation4], 1 }
 0x238   :  { %601 = vsyncpa [#allocation7], 1 }
 0x239   :  { %602 = vsyncpa [#allocation5], 1 }

</bundles_post_ra>
